<compile_context>
chip_gen: v7x
topology: tpu7x:2x2x1
jax: 0.10.0
libtpu: 0.0.40
codegen_flags: <defaults>
</compile_context>

<pallas_src>
import jax
import jax.numpy as jnp
from jax.experimental import pallas as pl
from jax.experimental.pallas import tpu as pltpu


def _squeeze_alias_kernel(x_ref, o_ref):
    # The output buffer is aliased to the input buffer via
    # input_output_aliases={0: 0}, so the squeezed data is already in place.
    # Intentionally a data no-op: no DMA, no vector work, no VMEM footprint.
    del x_ref, o_ref


def squeeze_channels(x: jax.Array) -> jax.Array:
    """Pallas equivalent of torch.Tensor.squeeze(2) for a 3-D input.

    x: shape (B, C, 1)  ->  returns shape (B, C), same dtype.
    If axis 2 is not size 1, returns x unchanged (torch squeeze semantics).
    """
    assert x.ndim == 3, "SqueezeChannels expects a 3-D input"
    B, C, S = x.shape
    if S != 1:
        # torch's squeeze(2) is a no-op when the axis isn't size 1.
        return x

    # Drop the size-1 minor axis in the wrapper (metadata-only reshape) so the
    # pallas operand is a lane-dense 2-D (B, C) slab.
    x2d = x.reshape(B, C)
    itemsize = jnp.dtype(x.dtype).itemsize

    return pl.pallas_call(
        _squeeze_alias_kernel,
        out_shape=jax.ShapeDtypeStruct((B, C), x.dtype),
        in_specs=[pl.BlockSpec(memory_space=pltpu.MemorySpace.HBM)],
        out_specs=pl.BlockSpec(memory_space=pltpu.MemorySpace.HBM),
        # Output 0 aliases input 0: with donation this is a true zero-copy
        # squeeze; without donation XLA inserts the (single) copy itself.
        input_output_aliases={0: 0},
        cost_estimate=pl.CostEstimate(
            flops=0,
            transcendentals=0,
            bytes_accessed=2 * B * C * itemsize,
        ),
    )(x2d)


if __name__ == "__main__":
    key = jax.random.PRNGKey(0)
    k0, k1, k2 = jax.random.split(key, 3)

    # Small shapes consistent with the module: (batch, channels, 1),
    # typical output of a global pooling over the time axis.
    x_small = jax.random.normal(k0, (2, 4, 1), dtype=jnp.float32)
    x_lane = jax.random.normal(k1, (8, 128, 1), dtype=jnp.float32)
    x_noop = jax.random.normal(k2, (2, 4, 3), dtype=jnp.float32)

    out_small = jax.block_until_ready(squeeze_channels(x_small))
    out_lane = jax.block_until_ready(squeeze_channels(x_lane))
    out_noop = jax.block_until_ready(squeeze_channels(x_noop))

    # Verify semantics against the plain-JAX reference (torch squeeze(2)).
    assert out_small.shape == (2, 4), out_small.shape
    assert out_small.dtype == x_small.dtype
    assert jnp.array_equal(out_small, jnp.squeeze(x_small, axis=2))

    assert out_lane.shape == (8, 128), out_lane.shape
    assert out_lane.dtype == x_lane.dtype
    assert jnp.array_equal(out_lane, jnp.squeeze(x_lane, axis=2))

    # Non-size-1 axis 2: torch squeeze(2) is a no-op passthrough.
    assert out_noop.shape == (2, 4, 3), out_noop.shape
    assert jnp.array_equal(out_noop, x_noop)

    print("KERNEL_OK")
</pallas_src>

<mosaic_0001>
module attributes {stable_mosaic.version = 11 : i64} {
  func.func @_squeeze_alias_kernel(%arg0: memref<2x4xf32, #tpu.memory_space<hbm>>, %arg1: memref<2x4xf32, #tpu.memory_space<hbm>>) attributes {dimension_semantics = [], scalar_prefetch = 0 : i64, scratch_operands = 0 : i64, tpu.core_type = #tpu.core_type<tc>} {
    return
  }
}

</mosaic_0001>

<bundles_post_ra>
// kernel: tpu_custom_call.1
= control target key start
LH: loop header
LB: loop body
LE: loop exit
PB: predicated region body
PF: predicated region fallthrough
CT: control target
= control target key end

     0   :  { %s16_s0 = inlined_call_operand.hbm [shape: f32[2,4], index: 0, kind: input, shape index: {}, may-alias: {0,1}]   ;;  %s17_s1 = inlined_call_operand.hbm [shape: f32[2,4], index: 1, kind: output, shape index: {}, may-alias: {0,1}]  }

</bundles_post_ra>
